<compile_context>
chip_gen: v7x
topology: tpu7x:2x2x1
jax: 0.10.0
libtpu: 0.0.40
codegen_flags: <defaults>
</compile_context>

<pallas_src>
import functools

import jax
import jax.numpy as jnp
from jax.experimental import pallas as pl
from jax.experimental.pallas import tpu as pltpu


def _projector_kernel(x_ref, colmat_ref, gamma_ref, w_ref, o_ref, lhs_ref, *,
                      kernel_size, tokens_per_side, eps):
    """One (batch, ht_split, ht_tile) grid step.

    x_ref:      (P, P, Hv)   one image, spatial (row, col), input dtype
    colmat_ref: (T, P)       0/1 column-pool selector, input dtype
    gamma_ref:  (1, Hv)      GemmaRMSNorm weight
    w_ref:      (Hv, tn)     projection weight tile, input dtype
    o_ref:      (T*T, tn)    output tile
    lhs_ref:    (T*T, Hv)    persistent normalized lhs (input dtype, scratch)
    """
    K = kernel_size
    T = tokens_per_side
    inv_k2 = 1.0 / float(K * K)

    # ---- Pooling + RMSNorm only on the first Ht tile of each (batch, split);
    #      the result is carried in lhs_ref across the "arbitrary" j axis.
    @pl.when(pl.program_id(2) == 0)
    def _compute_lhs():
        colmat = colmat_ref[...]                                   # (T, P)
        gamma = 1.0 + gamma_ref[...].astype(jnp.float32)           # (1, Hv)
        for a in range(T):                                         # token row
            # Sum K spatial rows (f32 VPU adds); 1/K^2 applied below.
            rowsum = x_ref[a * K].astype(jnp.float32)               # (P, Hv)
            for kr in range(1, K):
                rowsum = rowsum + x_ref[a * K + kr].astype(jnp.float32)
            # Column pooling: tiny (T, P) @ (P, Hv) matmul in the input dtype
            # with f32 accumulation (native MXU rate for bf16 deployments).
            pooled = jnp.dot(colmat, rowsum.astype(colmat.dtype),
                             preferred_element_type=jnp.float32)    # (T, Hv)
            pooled = pooled * inv_k2
            # GemmaRMSNorm (f32 statistics), then (1 + weight) scale.
            var = jnp.mean(pooled * pooled, axis=-1, keepdims=True)
            normed = pooled * jax.lax.rsqrt(var + eps) * gamma
            lhs_ref[pl.ds(a * T, T), :] = normed.astype(lhs_ref.dtype)

    # ---- Projection matmul for this Ht tile (input dtype, f32 accumulation).
    proj = jnp.dot(lhs_ref[...], w_ref[...],
                   preferred_element_type=jnp.float32)
    o_ref[...] = proj.astype(o_ref.dtype)


def _vmem_capacity_bytes():
    try:
        return int(pltpu.get_tpu_info().vmem_capacity_bytes)
    except Exception:
        return 64 << 20   # conservative fallback (v7x per-core VMEM)


def _pick_ht_tile(ht, max_cols):
    """Largest divisor of `ht` that is a multiple of 128 and <= max_cols.

    Falls back to the full extent (always layout-legal) when no such divisor
    exists — never returns a lane-sparse or non-divisor tile.
    """
    if ht <= max_cols:
        return ht
    start = int(max_cols) - int(max_cols) % 128
    for cand in range(start, 127, -128):
        if ht % cand == 0:
            return cand
    return ht


def _w_index_map(j_tiles):
    def idx(b, s, j):
        return (0, s * j_tiles + j)
    return idx


def _out_index_map(j_tiles):
    def idx(b, s, j):
        return (b, 0, s * j_tiles + j)
    return idx


def gemma3_mm_projector(vision_outputs, proj_weight, rms_weight, *,
                        patches_per_image, tokens_per_side, eps=1e-6,
                        ht_splits=1, max_ht_tile=None):
    """Pallas TPU implementation of Gemma3MultiModalProjector.forward.

    vision_outputs: (B, P*P, Hv)
    proj_weight:    (Hv, Ht)   mm_input_projection_weight
    rms_weight:     (Hv,)      GemmaRMSNorm weight
    ht_splits:      parallel Ht splits (set 2 on v7x to keep both TensorCores
                    busy for batch-1 vision workloads; 1 elsewhere).
    max_ht_tile:    optional cap on the Ht tile size (testing / tuning).
    """
    B, num_patches, Hv = vision_outputs.shape
    P = patches_per_image
    T = tokens_per_side
    K = P // T
    assert num_patches == P * P, "seq dim must be patches_per_image**2"
    assert T * K == P, "patches_per_image must be divisible by tokens_per_side"
    Ht = proj_weight.shape[1]
    dtype = vision_outputs.dtype
    itemsize = jnp.dtype(dtype).itemsize

    # Matmul runs in the activation dtype (output is type_as(vision_outputs)).
    proj_weight = proj_weight.astype(dtype)

    # (B, P*P, Hv) -> (B, P, P, Hv): free, contiguous (spatial row = seq // P).
    x4 = vision_outputs.reshape(B, P, P, Hv)

    # 0/1 column-pool selector in the input dtype (exact in any dtype); the
    # 1/K^2 average scale is applied in f32 inside the kernel.
    t_idx = jnp.arange(T)
    p_idx = jnp.arange(P)
    colmat = ((p_idx[None, :] // K) == t_idx[:, None]).astype(dtype)

    gamma2d = rms_weight.reshape(1, Hv)

    # ---- Ht splitting / tiling from the per-generation VMEM budget.
    S = int(ht_splits) if ht_splits and Ht % int(ht_splits) == 0 else 1
    ht_per_split = Ht // S

    vmem_cap = _vmem_capacity_bytes()
    budget = vmem_cap - (8 << 20)                         # headroom
    x_bytes = P * P * Hv * itemsize
    lhs_bytes = T * T * Hv * itemsize
    fixed = 2 * x_bytes + lhs_bytes + (T * P + 2 * Hv) * 4 + (2 << 20)
    per_col = 2 * (Hv + T * T) * itemsize                 # dbl-buffered w + out
    max_cols = max((budget - fixed) // per_col, 128)
    if max_ht_tile is not None:
        max_cols = min(max_cols, int(max_ht_tile))
    tn = _pick_ht_tile(ht_per_split, max_cols)
    J = ht_per_split // tn

    vmem_need = fixed + per_col * tn
    # Always pass an explicit limit: v5e's scoped default (16 MiB) is too low
    # at real sizes; clamp below physical so v7x's 64 MiB is respected.
    vmem_limit = int(min(vmem_cap - (2 << 20), max(2 * vmem_need, 32 << 20)))

    kernel = functools.partial(_projector_kernel, kernel_size=K,
                               tokens_per_side=T, eps=eps)

    # TODO(synk): if x DMA shows up exposed at batch boundaries on v5e, deepen
    # the x pipeline (pipeline_mode=pl.Buffered(3) on the x BlockSpec).
    out = pl.pallas_call(
        kernel,
        out_shape=jax.ShapeDtypeStruct((B, T * T, Ht), dtype),
        grid=(B, S, J),
        in_specs=[
            pl.BlockSpec((None, P, P, Hv), lambda b, s, j: (b, 0, 0, 0)),
            pl.BlockSpec((T, P), lambda b, s, j: (0, 0)),
            pl.BlockSpec((1, Hv), lambda b, s, j: (0, 0)),
            # Constant block index when S == J == 1 => the whole projection
            # weight stays resident in VMEM, fetched from HBM only once for
            # the entire call instead of once per image.
            pl.BlockSpec((Hv, tn), _w_index_map(J)),
        ],
        out_specs=pl.BlockSpec((None, T * T, tn), _out_index_map(J)),
        scratch_shapes=[pltpu.VMEM((T * T, Hv), dtype)],
        compiler_params=pltpu.CompilerParams(
            dimension_semantics=("parallel", "parallel", "arbitrary"),
            vmem_limit_bytes=vmem_limit),
    )(x4, colmat, gamma2d, proj_weight)
    return out


def _reference(vision_outputs, proj_weight, rms_weight, *,
               patches_per_image, tokens_per_side, eps=1e-6):
    """Pure-JAX transcription of the PyTorch forward (for verification)."""
    B, num_patches, Hv = vision_outputs.shape
    P, T = patches_per_image, tokens_per_side
    K = P // T
    x = jnp.transpose(vision_outputs, (0, 2, 1)).reshape(B, Hv, P, P)  # NCHW
    xf = x.astype(jnp.float32)
    pooled = xf.reshape(B, Hv, T, K, T, K).mean(axis=(3, 5))           # AvgPool
    pooled = pooled.reshape(B, Hv, T * T)
    pooled = jnp.transpose(pooled, (0, 2, 1))                          # (B,T2,Hv)
    var = jnp.mean(pooled * pooled, axis=-1, keepdims=True)
    normed = pooled * jax.lax.rsqrt(var + eps)
    normed = normed * (1.0 + rms_weight.astype(jnp.float32))
    normed = normed.astype(vision_outputs.dtype).astype(jnp.float32)
    out = jnp.matmul(normed, proj_weight.astype(jnp.float32),
                     precision=jax.lax.Precision.HIGHEST)
    return out.astype(vision_outputs.dtype)


if __name__ == "__main__":
    # Toy Gemma3-like config: P=8 patches/side, T=4 tokens/side (K=2 pool),
    # Hv=128 vision hidden, Ht=256 text hidden.
    B, P, T, Hv, Ht = 2, 8, 4, 128, 256
    eps = 1e-6

    key = jax.random.PRNGKey(0)
    kx, kw, kg = jax.random.split(key, 3)
    x_f32 = jax.random.normal(kx, (B, P * P, Hv), dtype=jnp.float32)
    w_f32 = jax.random.normal(kw, (Hv, Ht), dtype=jnp.float32) * 0.02
    g_f32 = jax.random.normal(kg, (Hv,), dtype=jnp.float32) * 0.1

    def check(out, ref, atol, rtol, tag):
        assert out.shape == (B, T * T, Ht), (tag, out.shape)
        a = out.astype(jnp.float32)
        b = ref.astype(jnp.float32)
        err = float(jnp.max(jnp.abs(a - b)))
        assert jnp.allclose(a, b, atol=atol, rtol=rtol), (tag, err)

    ref_f32 = _reference(x_f32, w_f32, g_f32, patches_per_image=P,
                         tokens_per_side=T, eps=eps)

    # 1) f32, resident-weight fast path (grid = (B, 1, 1)).
    out = jax.block_until_ready(gemma3_mm_projector(
        x_f32, w_f32, g_f32, patches_per_image=P, tokens_per_side=T, eps=eps))
    check(out, ref_f32, 1e-3, 1e-2, "f32 resident")

    # 2) f32, forced Ht tiling (J = 2): exercises the hoisted pooling/norm
    #    and the lhs carry across the "arbitrary" axis.
    out = jax.block_until_ready(gemma3_mm_projector(
        x_f32, w_f32, g_f32, patches_per_image=P, tokens_per_side=T, eps=eps,
        max_ht_tile=128))
    check(out, ref_f32, 1e-3, 1e-2, "f32 tiled")

    # 3) f32, 2-way parallel Ht split (v7x megacore plan).
    out = jax.block_until_ready(gemma3_mm_projector(
        x_f32, w_f32, g_f32, patches_per_image=P, tokens_per_side=T, eps=eps,
        ht_splits=2))
    check(out, ref_f32, 1e-3, 1e-2, "f32 split")

    # 4) bf16 (deployment dtype).
    x_bf16 = x_f32.astype(jnp.bfloat16)
    w_bf16 = w_f32.astype(jnp.bfloat16)
    g_bf16 = g_f32.astype(jnp.bfloat16)
    ref_bf16 = _reference(x_bf16.astype(jnp.float32),
                          w_bf16.astype(jnp.float32),
                          g_bf16.astype(jnp.float32),
                          patches_per_image=P, tokens_per_side=T, eps=eps)
    out = jax.block_until_ready(gemma3_mm_projector(
        x_bf16, w_bf16, g_bf16, patches_per_image=P, tokens_per_side=T,
        eps=eps))
    check(out, ref_bf16, 2e-2, 2e-2, "bf16 resident")

    print("KERNEL_OK")
</pallas_src>

<mosaic_0001>
module attributes {stable_mosaic.version = 11 : i64} {
  func.func @_projector_kernel(%arg0: i32, %arg1: i32, %arg2: i32, %arg3: memref<1x8x8x128xf32, #tpu.memory_space<vmem>>, %arg4: memref<4x8xf32, #tpu.memory_space<vmem>>, %arg5: memref<1x128xf32, #tpu.memory_space<vmem>>, %arg6: memref<128x256xf32, #tpu.memory_space<vmem>>, %arg7: memref<1x16x256xf32, #tpu.memory_space<vmem>>, %arg8: memref<16x128xf32, #tpu.memory_space<vmem>>) attributes {dimension_semantics = [#tpu.dimension_semantics<parallel>, #tpu.dimension_semantics<parallel>, #tpu.dimension_semantics<arbitrary>], iteration_bounds = array<i64: 2, 1, 1>, scalar_prefetch = 0 : i64, scratch_operands = 1 : i64, tpu.core_type = #tpu.core_type<tc>, window_params = [{transform_indices = @transform_0, window_bounds = array<i64: 1, 8, 8, 128>}, {pipeline_mode = #tpu.pipeline_mode<synchronous>, transform_indices = @transform_1, window_bounds = array<i64: 4, 8>}, {pipeline_mode = #tpu.pipeline_mode<synchronous>, transform_indices = @transform_2, window_bounds = array<i64: 1, 128>}, {transform_indices = @transform_3, window_bounds = array<i64: 128, 256>}, {transform_indices = @transform_4, window_bounds = array<i64: 1, 16, 256>}]} {
    %c0_i32 = arith.constant 0 : i32
    %0 = arith.cmpi eq, %arg2, %c0_i32 : i32
    %1 = arith.extui %0 : i1 to i32
    %c0_i32_0 = arith.constant 0 : i32
    %2 = arith.cmpi ne, %1, %c0_i32_0 : i32
    scf.if %2 {
      %c0_7 = arith.constant 0 : index
      %c0_8 = arith.constant 0 : index
      %9 = vector.load %arg4[%c0_7, %c0_8] : memref<4x8xf32, #tpu.memory_space<vmem>>, vector<4x8xf32>
      %c0_9 = arith.constant 0 : index
      %c0_10 = arith.constant 0 : index
      %10 = vector.load %arg5[%c0_9, %c0_10] : memref<1x128xf32, #tpu.memory_space<vmem>>, vector<1x128xf32>
      %cst_11 = arith.constant 1.000000e+00 : f32
      %11 = vector.broadcast %cst_11 : f32 to vector<1x128xf32>
      %12 = arith.addf %11, %10 : vector<1x128xf32>
      %c0_12 = arith.constant 0 : index
      %c0_13 = arith.constant 0 : index
      %c0_14 = arith.constant 0 : index
      %c0_15 = arith.constant 0 : index
      %13 = vector.load %arg3[%c0_12, %c0_13, %c0_14, %c0_15] : memref<1x8x8x128xf32, #tpu.memory_space<vmem>>, vector<1x1x8x128xf32>
      %14 = vector.shape_cast %13 : vector<1x1x8x128xf32> to vector<8x128xf32>
      %c0_16 = arith.constant 0 : index
      %c1 = arith.constant 1 : index
      %c0_17 = arith.constant 0 : index
      %c0_18 = arith.constant 0 : index
      %15 = vector.load %arg3[%c0_16, %c1, %c0_17, %c0_18] : memref<1x8x8x128xf32, #tpu.memory_space<vmem>>, vector<1x1x8x128xf32>
      %16 = vector.shape_cast %15 : vector<1x1x8x128xf32> to vector<8x128xf32>
      %17 = arith.addf %14, %16 : vector<8x128xf32>
      %cst_19 = arith.constant dense<0.000000e+00> : vector<4x128xf32>
      %18 = tpu.matmul %9, %17, %cst_19 {dimension_numbers = #tpu.dot_dimension_numbers<[1], [0], [0], [1], [0, 0, 1, 1], [], []>} : vector<4x8xf32>, vector<8x128xf32>, vector<4x128xf32> -> vector<4x128xf32>
      %cst_20 = arith.constant 2.500000e-01 : f32
      %19 = vector.broadcast %cst_20 : f32 to vector<4x128xf32>
      %20 = arith.mulf %18, %19 : vector<4x128xf32>
      %21 = arith.mulf %20, %20 : vector<4x128xf32>
      %cst_21 = arith.constant dense<0.000000e+00> : vector<4xf32>
      %22 = vector.multi_reduction <add>, %21, %cst_21 [1] : vector<4x128xf32> to vector<4xf32>
      %23 = vector.shape_cast %22 : vector<4xf32> to vector<4x1xf32>
      %cst_22 = arith.constant 1.280000e+02 : f32
      %24 = vector.broadcast %cst_22 : f32 to vector<4x1xf32>
      %25 = arith.divf %23, %24 : vector<4x1xf32>
      %cst_23 = arith.constant 9.99999997E-7 : f32
      %26 = vector.broadcast %cst_23 : f32 to vector<4x1xf32>
      %27 = arith.addf %25, %26 : vector<4x1xf32>
      %28 = math.rsqrt %27 : vector<4x1xf32>
      %29 = vector.broadcast %28 : vector<4x1xf32> to vector<4x128xf32>
      %30 = arith.mulf %20, %29 : vector<4x128xf32>
      %31 = vector.broadcast %12 : vector<1x128xf32> to vector<4x128xf32>
      %32 = arith.mulf %30, %31 : vector<4x128xf32>
      %c0_24 = arith.constant 0 : index
      %c0_25 = arith.constant 0 : index
      %33 = vector.load %arg8[%c0_24, %c0_25] : memref<16x128xf32, #tpu.memory_space<vmem>>, vector<4x128xf32>
      tpu.vector_store %arg8[%c0_24, %c0_25], %32 {strides = array<i32>} : memref<16x128xf32, #tpu.memory_space<vmem>>, vector<4x128xf32>,
      %c0_26 = arith.constant 0 : index
      %c2 = arith.constant 2 : index
      %c0_27 = arith.constant 0 : index
      %c0_28 = arith.constant 0 : index
      %34 = vector.load %arg3[%c0_26, %c2, %c0_27, %c0_28] : memref<1x8x8x128xf32, #tpu.memory_space<vmem>>, vector<1x1x8x128xf32>
      %35 = vector.shape_cast %34 : vector<1x1x8x128xf32> to vector<8x128xf32>
      %c0_29 = arith.constant 0 : index
      %c3 = arith.constant 3 : index
      %c0_30 = arith.constant 0 : index
      %c0_31 = arith.constant 0 : index
      %36 = vector.load %arg3[%c0_29, %c3, %c0_30, %c0_31] : memref<1x8x8x128xf32, #tpu.memory_space<vmem>>, vector<1x1x8x128xf32>
      %37 = vector.shape_cast %36 : vector<1x1x8x128xf32> to vector<8x128xf32>
      %38 = arith.addf %35, %37 : vector<8x128xf32>
      %cst_32 = arith.constant dense<0.000000e+00> : vector<4x128xf32>
      %39 = tpu.matmul %9, %38, %cst_32 {dimension_numbers = #tpu.dot_dimension_numbers<[1], [0], [0], [1], [0, 0, 1, 1], [], []>} : vector<4x8xf32>, vector<8x128xf32>, vector<4x128xf32> -> vector<4x128xf32>
      %cst_33 = arith.constant 2.500000e-01 : f32
      %40 = vector.broadcast %cst_33 : f32 to vector<4x128xf32>
      %41 = arith.mulf %39, %40 : vector<4x128xf32>
      %42 = arith.mulf %41, %41 : vector<4x128xf32>
      %cst_34 = arith.constant dense<0.000000e+00> : vector<4xf32>
      %43 = vector.multi_reduction <add>, %42, %cst_34 [1] : vector<4x128xf32> to vector<4xf32>
      %44 = vector.shape_cast %43 : vector<4xf32> to vector<4x1xf32>
      %cst_35 = arith.constant 1.280000e+02 : f32
      %45 = vector.broadcast %cst_35 : f32 to vector<4x1xf32>
      %46 = arith.divf %44, %45 : vector<4x1xf32>
      %cst_36 = arith.constant 9.99999997E-7 : f32
      %47 = vector.broadcast %cst_36 : f32 to vector<4x1xf32>
      %48 = arith.addf %46, %47 : vector<4x1xf32>
      %49 = math.rsqrt %48 : vector<4x1xf32>
      %50 = vector.broadcast %49 : vector<4x1xf32> to vector<4x128xf32>
      %51 = arith.mulf %41, %50 : vector<4x128xf32>
      %52 = vector.broadcast %12 : vector<1x128xf32> to vector<4x128xf32>
      %53 = arith.mulf %51, %52 : vector<4x128xf32>
      %c4 = arith.constant 4 : index
      %c0_37 = arith.constant 0 : index
      %54 = vector.load %arg8[%c4, %c0_37] : memref<16x128xf32, #tpu.memory_space<vmem>>, vector<4x128xf32>
      tpu.vector_store %arg8[%c4, %c0_37], %53 {strides = array<i32>} : memref<16x128xf32, #tpu.memory_space<vmem>>, vector<4x128xf32>,
      %c0_38 = arith.constant 0 : index
      %c4_39 = arith.constant 4 : index
      %c0_40 = arith.constant 0 : index
      %c0_41 = arith.constant 0 : index
      %55 = vector.load %arg3[%c0_38, %c4_39, %c0_40, %c0_41] : memref<1x8x8x128xf32, #tpu.memory_space<vmem>>, vector<1x1x8x128xf32>
      %56 = vector.shape_cast %55 : vector<1x1x8x128xf32> to vector<8x128xf32>
      %c0_42 = arith.constant 0 : index
      %c5 = arith.constant 5 : index
      %c0_43 = arith.constant 0 : index
      %c0_44 = arith.constant 0 : index
      %57 = vector.load %arg3[%c0_42, %c5, %c0_43, %c0_44] : memref<1x8x8x128xf32, #tpu.memory_space<vmem>>, vector<1x1x8x128xf32>
      %58 = vector.shape_cast %57 : vector<1x1x8x128xf32> to vector<8x128xf32>
      %59 = arith.addf %56, %58 : vector<8x128xf32>
      %cst_45 = arith.constant dense<0.000000e+00> : vector<4x128xf32>
      %60 = tpu.matmul %9, %59, %cst_45 {dimension_numbers = #tpu.dot_dimension_numbers<[1], [0], [0], [1], [0, 0, 1, 1], [], []>} : vector<4x8xf32>, vector<8x128xf32>, vector<4x128xf32> -> vector<4x128xf32>
      %cst_46 = arith.constant 2.500000e-01 : f32
      %61 = vector.broadcast %cst_46 : f32 to vector<4x128xf32>
      %62 = arith.mulf %60, %61 : vector<4x128xf32>
      %63 = arith.mulf %62, %62 : vector<4x128xf32>
      %cst_47 = arith.constant dense<0.000000e+00> : vector<4xf32>
      %64 = vector.multi_reduction <add>, %63, %cst_47 [1] : vector<4x128xf32> to vector<4xf32>
      %65 = vector.shape_cast %64 : vector<4xf32> to vector<4x1xf32>
      %cst_48 = arith.constant 1.280000e+02 : f32
      %66 = vector.broadcast %cst_48 : f32 to vector<4x1xf32>
      %67 = arith.divf %65, %66 : vector<4x1xf32>
      %cst_49 = arith.constant 9.99999997E-7 : f32
      %68 = vector.broadcast %cst_49 : f32 to vector<4x1xf32>
      %69 = arith.addf %67, %68 : vector<4x1xf32>
      %70 = math.rsqrt %69 : vector<4x1xf32>
      %71 = vector.broadcast %70 : vector<4x1xf32> to vector<4x128xf32>
      %72 = arith.mulf %62, %71 : vector<4x128xf32>
      %73 = vector.broadcast %12 : vector<1x128xf32> to vector<4x128xf32>
      %74 = arith.mulf %72, %73 : vector<4x128xf32>
      %c8 = arith.constant 8 : index
      %c0_50 = arith.constant 0 : index
      %75 = vector.load %arg8[%c8, %c0_50] : memref<16x128xf32, #tpu.memory_space<vmem>>, vector<4x128xf32>
      tpu.vector_store %arg8[%c8, %c0_50], %74 {strides = array<i32>} : memref<16x128xf32, #tpu.memory_space<vmem>>, vector<4x128xf32>,
      %c0_51 = arith.constant 0 : index
      %c6 = arith.constant 6 : index
      %c0_52 = arith.constant 0 : index
      %c0_53 = arith.constant 0 : index
      %76 = vector.load %arg3[%c0_51, %c6, %c0_52, %c0_53] : memref<1x8x8x128xf32, #tpu.memory_space<vmem>>, vector<1x1x8x128xf32>
      %77 = vector.shape_cast %76 : vector<1x1x8x128xf32> to vector<8x128xf32>
      %c0_54 = arith.constant 0 : index
      %c7 = arith.constant 7 : index
      %c0_55 = arith.constant 0 : index
      %c0_56 = arith.constant 0 : index
      %78 = vector.load %arg3[%c0_54, %c7, %c0_55, %c0_56] : memref<1x8x8x128xf32, #tpu.memory_space<vmem>>, vector<1x1x8x128xf32>
      %79 = vector.shape_cast %78 : vector<1x1x8x128xf32> to vector<8x128xf32>
      %80 = arith.addf %77, %79 : vector<8x128xf32>
      %cst_57 = arith.constant dense<0.000000e+00> : vector<4x128xf32>
      %81 = tpu.matmul %9, %80, %cst_57 {dimension_numbers = #tpu.dot_dimension_numbers<[1], [0], [0], [1], [0, 0, 1, 1], [], []>} : vector<4x8xf32>, vector<8x128xf32>, vector<4x128xf32> -> vector<4x128xf32>
      %cst_58 = arith.constant 2.500000e-01 : f32
      %82 = vector.broadcast %cst_58 : f32 to vector<4x128xf32>
      %83 = arith.mulf %81, %82 : vector<4x128xf32>
      %84 = arith.mulf %83, %83 : vector<4x128xf32>
      %cst_59 = arith.constant dense<0.000000e+00> : vector<4xf32>
      %85 = vector.multi_reduction <add>, %84, %cst_59 [1] : vector<4x128xf32> to vector<4xf32>
      %86 = vector.shape_cast %85 : vector<4xf32> to vector<4x1xf32>
      %cst_60 = arith.constant 1.280000e+02 : f32
      %87 = vector.broadcast %cst_60 : f32 to vector<4x1xf32>
      %88 = arith.divf %86, %87 : vector<4x1xf32>
      %cst_61 = arith.constant 9.99999997E-7 : f32
      %89 = vector.broadcast %cst_61 : f32 to vector<4x1xf32>
      %90 = arith.addf %88, %89 : vector<4x1xf32>
      %91 = math.rsqrt %90 : vector<4x1xf32>
      %92 = vector.broadcast %91 : vector<4x1xf32> to vector<4x128xf32>
      %93 = arith.mulf %83, %92 : vector<4x128xf32>
      %94 = vector.broadcast %12 : vector<1x128xf32> to vector<4x128xf32>
      %95 = arith.mulf %93, %94 : vector<4x128xf32>
      %c12 = arith.constant 12 : index
      %c0_62 = arith.constant 0 : index
      %96 = vector.load %arg8[%c12, %c0_62] : memref<16x128xf32, #tpu.memory_space<vmem>>, vector<4x128xf32>
      tpu.vector_store %arg8[%c12, %c0_62], %95 {strides = array<i32>} : memref<16x128xf32, #tpu.memory_space<vmem>>, vector<4x128xf32>,
    } else {
    }
    %c0 = arith.constant 0 : index
    %c0_1 = arith.constant 0 : index
    %3 = vector.load %arg8[%c0, %c0_1] : memref<16x128xf32, #tpu.memory_space<vmem>>, vector<16x128xf32>
    %c0_2 = arith.constant 0 : index
    %c0_3 = arith.constant 0 : index
    %4 = vector.load %arg6[%c0_2, %c0_3] : memref<128x256xf32, #tpu.memory_space<vmem>>, vector<128x256xf32>
    %cst = arith.constant dense<0.000000e+00> : vector<16x256xf32>
    %5 = tpu.matmul %3, %4, %cst {dimension_numbers = #tpu.dot_dimension_numbers<[1], [0], [0], [1], [0, 0, 1, 1], [], []>} : vector<16x128xf32>, vector<128x256xf32>, vector<16x256xf32> -> vector<16x256xf32>
    %c0_4 = arith.constant 0 : index
    %c0_5 = arith.constant 0 : index
    %c0_6 = arith.constant 0 : index
    %6 = vector.load %arg7[%c0_4, %c0_5, %c0_6] : memref<1x16x256xf32, #tpu.memory_space<vmem>>, vector<1x16x256xf32>
    %7 = vector.shape_cast %6 : vector<1x16x256xf32> to vector<16x256xf32>
    %8 = vector.shape_cast %5 : vector<16x256xf32> to vector<1x16x256xf32>
    tpu.vector_store %arg7[%c0_4, %c0_5, %c0_6], %8 {strides = array<i32>} : memref<1x16x256xf32, #tpu.memory_space<vmem>>, vector<1x16x256xf32>,
    return
  }
  func.func @transform_0(%arg0: i32, %arg1: i32, %arg2: i32) -> (i32, i32, i32, i32) {
    %c0_i32 = arith.constant 0 : i32
    %c0_i32_0 = arith.constant 0 : i32
    %c0_i32_1 = arith.constant 0 : i32
    %c0_i32_2 = arith.constant 0 : i32
    return %arg0, %c0_i32, %c0_i32_0, %c0_i32_1 : i32, i32, i32, i32
  }
  func.func @transform_1(%arg0: i32, %arg1: i32, %arg2: i32) -> (i32, i32) {
    %c0_i32 = arith.constant 0 : i32
    %c0_i32_0 = arith.constant 0 : i32
    %c0_i32_1 = arith.constant 0 : i32
    return %c0_i32, %c0_i32_0 : i32, i32
  }
  func.func @transform_2(%arg0: i32, %arg1: i32, %arg2: i32) -> (i32, i32) {
    %c0_i32 = arith.constant 0 : i32
    %c0_i32_0 = arith.constant 0 : i32
    %c0_i32_1 = arith.constant 0 : i32
    return %c0_i32, %c0_i32_0 : i32, i32
  }
  func.func @transform_3(%arg0: i32, %arg1: i32, %arg2: i32) -> (i32, i32) {
    %c1_i32 = arith.constant 1 : i32
    %0 = arith.muli %arg1, %c1_i32 : i32
    %1 = arith.addi %0, %arg2 : i32
    %c0_i32 = arith.constant 0 : i32
    %c0_i32_0 = arith.constant 0 : i32
    return %c0_i32, %1 : i32, i32
  }
  func.func @transform_4(%arg0: i32, %arg1: i32, %arg2: i32) -> (i32, i32, i32) {
    %c1_i32 = arith.constant 1 : i32
    %0 = arith.muli %arg1, %c1_i32 : i32
    %1 = arith.addi %0, %arg2 : i32
    %c0_i32 = arith.constant 0 : i32
    %c0_i32_0 = arith.constant 0 : i32
    return %arg0, %c0_i32, %1 : i32, i32, i32
  }
}

</mosaic_0001>

<bundles_post_ra>
// kernel: tpu_custom_call.1
= control target key start
LH: loop header
LB: loop body
LE: loop exit
PB: predicated region body
PF: predicated region fallthrough
CT: control target
= control target key end

     0   :  { %9 = vsyncpa [#allocation4], 0  ;;  %s1587_s0 = inlined_call_operand.hbm [shape: f32[2,8,8,128], index: 0, kind: input, shape index: {}]   ;;  %s1588_s1 = inlined_call_operand.hbm [shape: f32[4,8], index: 1, kind: input, shape index: {}]   ;;  %s1589_s2 = inlined_call_operand.vmem [shape: f32[1,128], index: 2, kind: input, shape index: {}]   ;;  %s1590_s3 = inlined_call_operand.hbm [shape: f32[128,256], index: 3, kind: input, shape index: {}]   ;;  %s1591_s4 = inlined_call_operand.hbm [shape: f32[2,16,256], index: 4, kind: output, shape index: {}]  }
   0x1   :  { %11 = vsyncpa [#allocation4 + $0x1], 0 }
   0x2   :  { %12 = vsyncpa [#allocation7], 0 }
   0x3   :  { %13 = vsyncpa [#allocation5], 0 }
   0x4   :  { %15 = vsyncpa [#allocation5 + $0x1], 0  ;;  %s1287_s15 = smov 0   ;;  %s1289_s16 = smov 0  }
   0x5   :  { %s1291_s17 = smov 0   ;;  %s1293_s18 = smov 0  }
   0x6   :  { %s1295_s19 = smov 0   ;;  %s1297_s20 = smov 0  }
   0x7 LB: > { %s885_s21 = sadd.s32 4294967295, %s1248_s20   ;;  %s886_s22 = sadd.s32 4294967294, %s1248_s20   ;;  %s1248_s20 = sphi %s1297_s20, %s21_s20   ;;  %s1244_s19 = sphi %s1295_s19, %s1619_s19   ;;  %s1240_s18 = sphi %s1293_s18, %s1618_s18   ;;  %s1236_s17 = sphi %s1291_s17, %s1617_s17   ;;  %s1232_s16 = sphi %s1289_s16, %s1616_s16   ;;  %s1228_s15 = sphi %s1287_s15, %s1615_s15  }
   0x8   : > { %p54_p0 = scmp.ne.s32.totalorder %s1236_s17, %s1232_s16  ;;  %p55_p1 = scmp.eq.s32.totalorder %s1248_s20, 0 }
   0x9   : > { %p60_p2 = scmp.ne.s32.totalorder %s1232_s16, %s1228_s15  ;;  %p1325_p3 = scmp.eq.s32.totalorder %s885_s21, 0 }
   0xa   : > { %p158_p4 = scmp.eq.s32.totalorder %s885_s21, 1  ;;  %p1329_p5 = por %p55_p1, %p54_p0 }
   0xb   : > { %s1598_s24 = scalar_select %p1325_p3, 1, 0 }
   0xc   : > { %p164_p6 = scmp.eq.s32.totalorder %s886_s22, 1  ;;  %p1335_p7 = por %p1325_p3, %p60_p2 }
   0xd   : > { %p1339_p8 = por %p158_p4, %p54_p0  ;;  %p887_p10 = scmp.ge.s32.totalorder %s1248_s20, 1 }
   0xe   : > { %s1600_s26 = scalar_select %p1335_p7, 1, 0 }
   0xf   : > { %s1601_s27 = scalar_select %p1339_p8, 1, 0 }
  0x10   : > { %p1343_p9 = por %p164_p6, %p60_p2  ;;  %p171_p11 = scmp.lt.s32.totalorder %s1248_s20, 3 }
  0x11   : > { %s1250_s30 = smov [#allocation6]   ;;  %p1006_p1 = scmp.lt.s32.totalorder %s1248_s20, 2 }
  0x12   : > { %s1602_s28 = scalar_select %p1343_p9, 1, 0 }
  0x13   : > { %p1350_p13 = pnand %p887_p10, %p171_p11  ;;  %s184_s5 = sshll.u32 %s1250_s30, 4  ;;  %s185_s5 = int_to_ptr.vmem [resolvable:$true] %s184_s5 }
  0x14   : > { %p1359_p4 = pnand %p1006_p1, %p1329_p5  ;;  %s1251_s7 = smov [#allocation8]  }
  0x15   : > { %s1603_s29 = scalar_select %p1350_p13, 1, 0 }
  0x16   : > { %p989_p0 = pneg %p1350_p13  ;;  %s201_s8 = sshll.u32 %s1251_s7, 4  ;;  %s1369_s8 = int_to_ptr.vmem [resolvable:$true] %s201_s8 }
  0x17   : > { %s1604_s6 = scalar_select %p1359_p4, 1, 0 }
  0x18   : > { %p1365_p2 = pnand %p989_p0, %p1325_p3  ;;  %s1076_s12 = scalar_lea.hbm %s1588_s1, 64 }
  0x19   : > { %p1077_p5 = scmp.ne.s32.totalorder %s1588_s1, %s1076_s12  ;;  %p1083_p1 = scmp.lt.u32.totalorder %s1076_s12, %s1588_s1 }
  0x1a   : > { %p1078_p6 = pneg %p1365_p2 }
  0x1c   : > { %p1079_p10 = pnand %p1078_p6, %p1077_p5 }
  0x1e   : > { %p1080_p11 = pneg %p1079_p10 }
  0x20   : > { %p1085_p0 = pnand %p1083_p1, %p1080_p11 }
  0x22   : > { %1088 = shalt.err (!%p1085_p0)
}
  0x23   : > { %s1089_s25 = scalar_lea.vmem %s185_s5, 64  ;;  %p1097_p3 = scmp.lt.s32.totalorder %s185_s5, %s185_s5 }
  0x24   : > { %p1090_p12 = scmp.ne.s32.totalorder %s185_s5, %s1089_s25  ;;  %p1098_p7 = scmp.lt.s32.totalorder %s1089_s25, %s1089_s25 }
  0x26   : > { %p1092_p9 = pnand %p1090_p12, %p1078_p6  ;;  %p1099_p13 = por %p1098_p7, %p1097_p3 }
  0x28   : > { %p1093_p8 = pneg %p1092_p9 }
  0x2a   : > { %p1100_p4 = pnand %p1099_p13, %p1093_p8 }
  0x2c   : > { %1103 = shalt.err (!%p1100_p4)
}
  0x2d   : > { %992 = dma.hbm_to_vmem [thread:$0]  (!%p1365_p2), %s1588_s1, 64, %s185_s5, [#allocation7]  }
  0x2e   : > { %s1104_s12 = scalar_lea.hbm %s1590_s3, 4096 }
  0x2f   : > { %p1105_p9 = scmp.ne.s32.totalorder %s1590_s3, %s1104_s12  ;;  %p1111_p8 = scmp.lt.u32.totalorder %s1104_s12, %s1590_s3 }
  0x31   : > { %p1107_p3 = pnand %p1105_p9, %p1078_p6 }
  0x33   : > { %p1108_p7 = pneg %p1107_p3 }
  0x35   : > { %p1113_p12 = pnand %p1111_p8, %p1108_p7 }
  0x37   : > { %1116 = shalt.err (!%p1113_p12)
}
  0x38   : > { %s1117_s5 = scalar_lea.vmem %s1369_s8, 4096  ;;  %p1125_p10 = scmp.lt.s32.totalorder %s1369_s8, %s1369_s8 }
  0x39   : > { %p1118_p13 = scmp.ne.s32.totalorder %s1369_s8, %s1117_s5  ;;  %p1126_p11 = scmp.lt.s32.totalorder %s1117_s5, %s1117_s5 }
  0x3b   : > { %p1120_p4 = pnand %p1118_p13, %p1078_p6  ;;  %p1127_p1 = por %p1126_p11, %p1125_p10 }
  0x3d   : > { %p1121_p5 = pneg %p1120_p4 }
  0x3f   : > { %p1128_p0 = pnand %p1127_p1, %p1121_p5 }
  0x41   : > { %1131 = shalt.err (!%p1128_p0)
}
  0x42   : > { %s1252_s25 = smov 256   ;;  %s1253_s30 = smov 16  }
  0x43   : > { %995 = dma.hbm_to_vmem [thread:$0]  (!%p1365_p2), %s1590_s3, 4096, %s1369_s8, [#allocation7], %s1252_s25, %s1252_s25, %s1253_s30  }
  0x44   : > { %s215_s11 = sand.u32 1, %s1236_s17   ;;  %s40_s12 = sadd.s32 1, %s1244_s19 }
  0x45   : > { %s891_s13 = sshll.u32 %s215_s11, 6  ;;  %p42_p6 = scmp.ge.s32.totalorder %s40_s12, 2 }
  0x46   : > { %s915_s14 = sshll.u32 %s1244_s19, 10  ;;  %s219_s21 = scalar_lea.vmem [#allocation3], %s891_s13 }
  0x47   : > { %s226_s22 = sshll.u32 %s219_s21, 4  ;;  %s1621_s12 = smov (%p42_p6, %s40_s12), 0  ;;  %s1428_s22 = int_to_ptr.vmem [resolvable:$true] %s226_s22 }
  0x48   : > { %s1426_s9 = scalar_lea.hbm %s1587_s0, %s915_s14  ;;  %s44_s8 = ssub.s32 %s1244_s19, %s1621_s12 }
  0x49   : > { %p1432_p2 = scmp.eq.s32.totalorder %s44_s8, 0  ;;  %s1436_s30 = scalar_lea.sflag [#allocation4], %s215_s11 }
  0x4a   : > { %s1132_s7 = scalar_lea.hbm %s1426_s9, 1024  ;;  %p1607_p3 = scmp.ne.s32.totalorder %s1604_s6, 0 }
  0x4b   : > { %p1133_p9 = scmp.ne.s32.totalorder %s1426_s9, %s1132_s7  ;;  %s1137_s13 = scalar_lea.hbm %s1587_s0, 2048 }
  0x4c   : > { %p1134_p7 = pneg %p1607_p3  ;;  %p1138_p13 = scmp.lt.u32.totalorder %s1426_s9, %s1587_s0 }
  0x4d   : > { %p1139_p4 = scmp.lt.u32.totalorder %s1137_s13, %s1132_s7  ;;  %p1141_p10 = scmp.lt.u32.totalorder %s1132_s7, %s1426_s9 }
  0x4e   : > { %p1135_p8 = pnand %p1134_p7, %p1133_p9 }
  0x4f   : > { %p1140_p5 = por %p1139_p4, %p1138_p13 }
  0x50   : > { %p1136_p12 = pneg %p1135_p8 }
  0x51   : > { %p1142_p11 = por %p1141_p10, %p1140_p5 }
  0x53   : > { %p1143_p1 = pnand %p1142_p11, %p1136_p12 }
  0x55   : > { %1146 = shalt.err (!%p1143_p1)
}
  0x56   : > { %s1147_s11 = scalar_lea.vmem %s1428_s22, 1024  ;;  %s1254_s5 = smov [#allocation3]  }
  0x57   : > { %p1148_p0 = scmp.ne.s32.totalorder %s1428_s22, %s1147_s11  ;;  %s1152_s8 = sshll.u32 %s1254_s5, 4  ;;  %s1153_s8 = int_to_ptr.vmem [resolvable:$false] %s1152_s8 }
  0x58   : > { %s1154_s23 = scalar_lea.vmem %s1153_s8, 2048  ;;  %p1155_p8 = scmp.lt.s32.totalorder %s1428_s22, %s1153_s8 }
  0x59   : > { %p1150_p6 = pnand %p1148_p0, %p1134_p7  ;;  %p1156_p13 = scmp.lt.s32.totalorder %s1154_s23, %s1147_s11 }
  0x5b   : > { %p1151_p9 = pneg %p1150_p6  ;;  %p1157_p4 = por %p1156_p13, %p1155_p8 }
  0x5d   : > { %p1158_p5 = pnand %p1157_p4, %p1151_p9 }
  0x5f   : > { %1161 = shalt.err (!%p1158_p5)
}
  0x60   : > { %s1255_s7 = smov 128   ;;  %s1256_s10 = smov 8  }
  0x61   : > { %999 = dma.hbm_to_vmem [thread:$0]  (!%p1607_p3), %s1426_s9, 1024, %s1428_s22, %s1436_s30, %s1255_s7, %s1255_s7, %s1256_s10  }
  0x62   : > { %s1608_s13 = sadd.s32 1, %s1236_s17  ;;  %p1609_p7 = scmp.ne.s32.totalorder %s1603_s29, 0 }
  0x63   : > { %s1469_s14 = scalar_select %p1432_p2, %s1236_s17, %s1608_s13  }
  0x64   : > { %238 = sbr.rel (%p1609_p7) target bundleno = 741 (0x2e5), region = 36  ;;  %s1474_s21 = sand.u32 (!%p1609_p7), 1, %s1232_s16  }
  0x65   : > { %s895_s11 = sshll.u32 (!%p1609_p7), %s1474_s21, 6  ;;  %s241_s5 = scalar_lea.sflag (!%p1609_p7), [#allocation4], %s1474_s21 }
  0x66   : > { %s244_s8 = scalar_lea.vmem (!%p1609_p7), [#allocation3], %s895_s11  ;;  %p1610_p12 = scmp.ne.s32.totalorder (!%p1609_p7), %s1600_s26, 0 }
  0x6b   : > { %1215 = dma.done.wait (%p1610_p12), %s241_s5, 1024  }
  0x6c   : > { %1217 = vsyncadd (%p1610_p12), %s241_s5, 4294966272  ;;  %p1611_p2 = scmp.ne.s32.totalorder %s1598_s24, 0 }
  0x6e   : > { %1219 = dma.done.wait (%p1611_p2), [#allocation7], 4160  }
  0x6f   : > { %1221 = vsyncadd (%p1611_p2), [#allocation7], 4294963136  ;;  %v1257_v0 = vmov 0.0   ;;  %vm1258_vm0 = vmmov 0   ;;  %v288_v1 = vld [vmem:[%s244_s8] sm:$0xff]  ;;  %v899_v2 = vld [vmem:[%s244_s8 + $0x8] sm:$0xff] }
  0x70   : > { %925 = vmatprep.subr.mxu1 %v1257_v0  ;;  %927 = vmatprep.mubr.msk.f32.mxu1 %vm1258_vm0, %v1257_v0  ;;  %v291_v3 = vadd.f32 %v899_v2, %v288_v1  ;;  %v285_v4 = vld [vmem:[#allocation6] sm:$0xf]  ;;  %vm292_vm1 = vcmask 64512   ;;  %v901_v5 = vld [vmem:[%s244_s8 + $0x10] sm:$0xff]  ;;  %v902_v6 = vld [vmem:[%s244_s8 + $0x18] sm:$0xff]  ;;  %vm368_vm2 = vcmask 1043456  }
  0x71   : > { %741 = vmatprep.mubr.f32.mxu0 %v1257_v0  ;;  %v389_v7 = vadd.f32 %v902_v6, %v901_v5  ;;  %v904_v8 = vld [vmem:[%s244_s8 + $0x20] sm:$0xff]  ;;  %v905_v9 = vld [vmem:[%s244_s8 + $0x28] sm:$0xff]  ;;  %v907_v11 = vld [vmem:[%s244_s8 + $0x30] sm:$0xff]  ;;  %s898_s29 = sshll.u32 %s1474_s21, 5  ;;  %s916_s9 = sshll.u32 %s1240_s18, 9 }
  0x72   : > { %926 = vmatpush3.msra.mxu1 %v291_v3  ;;  %v475_v10 = vadd.f32 %v905_v9, %v904_v8  ;;  %v908_v12 = vld [vmem:[%s244_s8 + $0x38] sm:$0xff]  ;;  %v646_v14 = vld [vmem:[#allocation8 + $0x8] sm:$0xff]  ;;  %v645_v37 = vld [vmem:[#allocation8] sm:$0xff]  ;;  %s276_s6 = scalar_lea.vmem [#allocation9], %s898_s29  ;;  %s1538_s23 = scalar_lea.hbm %s1591_s4, %s916_s9 }
  0x73   : > { %928 = vmatmul.mubr.msk.f32.vlgmr.msra.gmra.mrb[0].mxu1 %vm292_vm1, %v285_v4  ;;  %930 = vmatprep.subr.mxu1 %v1257_v0  ;;  %v561_v13 = vadd.f32 %v908_v12, %v907_v11  ;;  %v648_v15 = vld [vmem:[#allocation8 + $0x18] sm:$0xff]  ;;  %v647_v38 = vld [vmem:[#allocation8 + $0x10] sm:$0xff]  ;;  %v650_v40 = vld [vmem:[#allocation8 + $0x28] sm:$0xff]  ;;  %s775_s22 = sshll.u32 %s276_s6, 4  ;;  %s759_s7 = scalar_lea.sflag [#allocation5], %s1474_s21  ;;  %s1533_s22 = int_to_ptr.vmem [resolvable:$true] %s775_s22 }
  0x74   : > { %931 = vmatpush3.msra.mxu1 %v389_v7  ;;  %932 = vmatprep.mubr.msk.f32.mxu1 %vm1258_vm0, %v1257_v0  ;;  %v945_v16 = vpack.c.bf16 %v648_v15, %v646_v14  ;;  %v947_v39 = vpack.c.bf16 %v647_v38, %v645_v37  ;;  %v652_v41 = vld [vmem:[#allocation8 + $0x38] sm:$0xff]  ;;  %v649_v43 = vld [vmem:[#allocation8 + $0x20] sm:$0xff]  ;;  %v651_v44 = vld [vmem:[#allocation8 + $0x30] sm:$0xff]  ;;  %s1162_s10 = scalar_lea.vmem %s1533_s22, 512  ;;  %p1612_p10 = scmp.ne.s32.totalorder %s1601_s27, 0 }
  0x75   : > { %935 = vmatprep.subr.mxu1 %v1257_v0  ;;  %v949_v42 = vpack.c.bf16 %v652_v41, %v650_v40  ;;  %v951_v45 = vpack.c.bf16 %v651_v44, %v649_v43  ;;  %v654_v46 = vld [vmem:[#allocation8 + $0x48] sm:$0xff]  ;;  %v656_v47 = vld [vmem:[#allocation8 + $0x58] sm:$0xff]  ;;  %v653_v49 = vld [vmem:[#allocation8 + $0x40] sm:$0xff]  ;;  %p1163_p3 = scmp.ne.s32.totalorder %s1533_s22, %s1162_s10  ;;  %s1259_s18 = smov [#allocation9]  }
  0x76   : > { %946 = vmatprep.subr.bf16.mxu0 %v945_v16  ;;  %v953_v48 = vpack.c.bf16 %v656_v47, %v654_v46  ;;  %v655_v50 = vld [vmem:[#allocation8 + $0x50] sm:$0xff]  ;;  %v658_v52 = vld [vmem:[#allocation8 + $0x68] sm:$0xff]  ;;  %v660_v53 = vld [vmem:[#allocation8 + $0x78] sm:$0xff]  ;;  %s1166_s13 = sshll.u32 %s1259_s18, 4  ;;  %s1167_s13 = int_to_ptr.vmem [resolvable:$false] %s1166_s13 }
  0x77   : > { %933 = vmatmul.mubr.msk.f32.vlgmr.msra.gmra.mrb[2].mxu1 %vm292_vm1, %v285_v4  ;;  %948 = vmatpush1.bf16.msra.mxu0 %v947_v39  ;;  %v955_v51 = vpack.c.bf16 %v655_v50, %v653_v49  ;;  %v957_v54 = vpack.c.bf16 %v660_v53, %v658_v52  ;;  %v657_v55 = vld [vmem:[#allocation8 + $0x60] sm:$0xff]  ;;  %v659_v56 = vld [vmem:[#allocation8 + $0x70] sm:$0xff]  ;;  %v662_v58 = vld [vmem:[#allocation8 + $0x88] sm:$0xff]  ;;  %p1164_p11 = pnand %p1163_p3, %p1612_p10  ;;  %s1168_s11 = scalar_lea.vmem %s1167_s13, 1024 }
  0x78   : > { %936 = vmatpush3.msra.mxu1 %v475_v10  ;;  %937 = vmatprep.mubr.msk.f32.mxu1 %vm1258_vm0, %v1257_v0  ;;  %v959_v57 = vpack.c.bf16 %v659_v56, %v657_v55  ;;  %v664_v59 = vld [vmem:[#allocation8 + $0x98] sm:$0xff]  ;;  %v661_v61 = vld [vmem:[#allocation8 + $0x80] sm:$0xff]  ;;  %v663_v62 = vld [vmem:[#allocation8 + $0x90] sm:$0xff]  ;;  %p1169_p0 = scmp.lt.s32.totalorder %s1533_s22, %s1167_s13  ;;  %p1170_p6 = scmp.lt.s32.totalorder %s1168_s11, %s1162_s10 }
  0x79   : > { %940 = vmatprep.subr.mxu1 %v1257_v0  ;;  %950 = vmatprep.subr.bf16.mxu0 %v949_v42  ;;  %v961_v60 = vpack.c.bf16 %v664_v59, %v662_v58  ;;  %v963_v63 = vpack.c.bf16 %v663_v62, %v661_v61  ;;  %v666_v1 = vld [vmem:[#allocation8 + $0xa8] sm:$0xff]  ;;  %v668_v2 = vld [vmem:[#allocation8 + $0xb8] sm:$0xff]  ;;  %v667_v5 = vld [vmem:[#allocation8 + $0xb0] sm:$0xff]  ;;  %p1165_p1 = pneg %p1164_p11 }
  0x7a   : > { %v965_v3 = vpack.c.bf16 %v668_v2, %v666_v1  ;;  %v670_v7 = vld [vmem:[#allocation8 + $0xc8] sm:$0xff]  ;;  %v672_v8 = vld [vmem:[#allocation8 + $0xd8] sm:$0xff]  ;;  %v669_v10 = vld [vmem:[#allocation8 + $0xc0] sm:$0xff]  ;;  %p1171_p9 = por %p1170_p6, %p1169_p0 }
  0x7b   : > { %938 = vmatmul.mubr.msk.f32.vlgmr.msra.gmra.mrb[4].mxu1 %vm292_vm1, %v285_v4  ;;  %952 = vmatpush1.bf16.msra.mxu0 %v951_v45  ;;  %v969_v9 = vpack.c.bf16 %v672_v8, %v670_v7  ;;  %v671_v11 = vld [vmem:[#allocation8 + $0xd0] sm:$0xff]  ;;  %v676_v14 = vld [vmem:[#allocation8 + $0xf8] sm:$0xff]  ;;  %v673_v16 = vld [vmem:[#allocation8 + $0xe0] sm:$0xff] }
  0x7c   : > { %941 = vmatpush3.msra.mxu1 %v561_v13  ;;  %942 = vmatprep.mubr.msk.f32.mxu1 %vm1258_vm0, %v1257_v0  ;;  %v971_v12 = vpack.c.bf16 %v671_v11, %v669_v10  ;;  %v674_v13 = vld [vmem:[#allocation8 + $0xe8] sm:$0xff]  ;;  %p1172_p8 = pnand %p1171_p9, %p1165_p1 }
  0x7d   : > { %954 = vmatprep.subr.bf16.mxu0 %v953_v48  ;;  %v973_v15 = vpack.c.bf16 %v676_v14, %v674_v13 }
  0x7f   : > { %943 = vmatmul.mubr.msk.f32.vlgmr.msra.gmra.mrb[6].mxu1 %vm292_vm1, %v285_v4  ;;  %956 = vmatpush1.bf16.msra.mxu0 %v955_v51  ;;  %v665_v4 = vld [vmem:[#allocation8 + $0xa0] sm:$0xff] }
  0x80   : > { %958 = vmatprep.subr.bf16.mxu0 %v957_v54  ;;  %v967_v6 = vpack.c.bf16 %v667_v5, %v665_v4 }
  0x83   : > { %960 = vmatpush1.bf16.msra.mxu0 %v959_v57 }
  0x84   : > { %962 = vmatprep.subr.bf16.mxu0 %v961_v60 }
  0x87   : > { %964 = vmatpush1.bf16.msra.mxu0 %v963_v63 }
  0x88   : > { %966 = vmatprep.subr.bf16.mxu0 %v965_v3 }
  0x8b   : > { %968 = vmatpush1.bf16.msra.mxu0 %v967_v6 }
  0x8c   : > { %970 = vmatprep.subr.bf16.mxu0 %v969_v9 }
  0x8f   : > { %972 = vmatpush1.bf16.msra.mxu0 %v971_v12 }
  0x90   : > { %974 = vmatprep.subr.bf16.mxu0 %v973_v15 }
 0x146   : > { %v362_v17 = vpop.f32.mrb[0].mxu1 }
 0x147   : > { %v1503_v18 = vmul.f32 0.25, %v362_v17  ;;  %v929_v19 = vpop.f32.mrb[1].mxu1  ;;  %v675_v17 = vld [vmem:[#allocation8 + $0xf0] sm:$0xff] }
 0x148   : > { %v975_v19 = vpack.c.bf16 %v675_v17, %v673_v16 }
 0x149   : > { %v367_v20 = vmul.f32 %v1503_v18, %v1503_v18 }
 0x14a   : > { %v456_v21 = vpop.f32.mrb[2].mxu1  ;;  %976 = vmatpush1.bf16.msra.mxu0 %v975_v19 }
 0x14b   : > { %v1507_v22 = vmul.f32 0.25, %v456_v21  ;;  %v934_v23 = vpop.f32.mrb[3].mxu1  ;;  %v369_v24 = vsel %vm368_vm2, %v367_v20, 0.0 }
 0x14c   : > { %370 = vadd.xlane.f32.xlu0 %v369_v24  ;;  %v378_v23 = vlaneseq }
 0x14d   : > { %v461_v25 = vmul.f32 %v1507_v22, %v1507_v22 }
 0x14e   : > { %v542_v26 = vpop.f32.mrb[4].mxu1 }
 0x14f   : > { %v1512_v27 = vmul.f32 0.25, %v542_v26  ;;  %v939_v28 = vpop.f32.mrb[5].mxu1  ;;  %v462_v29 = vsel %vm368_vm2, %v461_v25, 0.0 }
 0x150   : > { %463 = vadd.xlane.f32.xlu0 %v462_v29  ;;  %v379_v28 = vshrl.u32 %v378_v23, 7  ;;  %v286_v29 = vld [vmem:[%s1589_s2] sm:$0x1] }
 0x151   : > { %v547_v30 = vmul.f32 %v1512_v27, %v1512_v27 }
 0x152   : > { %v628_v31 = vpop.f32.mrb[6].mxu1 }
 0x153   : > { %v1517_v32 = vmul.f32 0.25, %v628_v31  ;;  %v944_v33 = vpop.f32.mrb[7].mxu1  ;;  %v548_v34 = vsel %vm368_vm2, %v547_v30, 0.0 }
 0x154   : > { %549 = vadd.xlane.f32.xlu1 %v548_v34  ;;  %v287_v34 = vadd.f32 1.0, %v286_v29 }
 0x155   : > { %v633_v35 = vmul.f32 %v1517_v32, %v1517_v32 }
 0x157   : > { %v634_v36 = vsel %vm368_vm2, %v633_v35, 0.0  ;;  %v380_v35 = vsub.s32 0, %v379_v28 }
 0x158   : > { %635 = vadd.xlane.f32.xlu1 %v634_v36 }
 0x159   : > { %v381_v39 = vrot.slane %v287_v34, %v380_v35 }
 0x1d9   : > { %v371_v20 = vpop.xlane.xlu0 %370 }
 0x1da   : > { %v373_v21 = vmul.f32 0.0078125, %v371_v20 }
 0x1dc   : > { %v374_v24 = vadd.f32 1e-06, %v373_v21 }
 0x1dd   : > { %v464_v25 = vpop.xlane.xlu0 %463 }
 0x1de   : > { %1068 = vrsqrt.f32 %v374_v24  ;;  %v465_v26 = vmul.f32 0.0078125, %v464_v25 }
 0x1e0   : > { %v466_v30 = vadd.f32 1e-06, %v465_v26 }
 0x1e1   : > { %v550_v31 = vpop.xlane.xlu1 %549 }
 0x1e2   : > { %1070 = vrsqrt.f32 %v466_v30  ;;  %v551_v33 = vmul.f32 0.0078125, %v550_v31 }
 0x1e4   : > { %v552_v36 = vadd.f32 1e-06, %v551_v33 }
 0x1e5   : > { %v636_v37 = vpop.xlane.xlu1 %635 }
 0x1e6   : > { %1072 = vrsqrt.f32 %v552_v36  ;;  %v637_v38 = vmul.f32 0.0078125, %v636_v37 }
 0x1e8   : > { %v1069_v40 = vpop.eup %1068  ;;  %v638_v41 = vadd.f32 1e-06, %v637_v38 }
 0x1e9   : > { %v376_v42 = vmul.f32 %v1069_v40, %v1503_v18 }
 0x1ea   : > { %1074 = vrsqrt.f32 %v638_v41 }
 0x1eb   : > { %v383_v43 = vmul.f32 %v381_v39, %v376_v42 }
 0x1ec   : > { %v1071_v44 = vpop.eup %1070 }
 0x1ed   : > { %384 = vst [vmem:[#allocation2] sm:$0xf] %v383_v43  ;;  %v468_v45 = vmul.f32 %v1071_v44, %v1507_v22 }
 0x1ef   : > { %v469_v46 = vmul.f32 %v468_v45, %v381_v39 }
 0x1f0   : > { %v1073_v47 = vpop.eup %1072 }
 0x1f1   : > { %470 = vst [vmem:[#allocation2 + $0x4] sm:$0xf] %v469_v46  ;;  %v554_v48 = vmul.f32 %v1073_v47, %v1512_v27 }
 0x1f3   : > { %v555_v49 = vmul.f32 %v554_v48, %v381_v39 }
 0x1f4   : > { %v1075_v50 = vpop.eup %1074 }
 0x1f5   : > { %556 = vst [vmem:[#allocation2 + $0x8] sm:$0xf] %v555_v49  ;;  %v640_v51 = vmul.f32 %v1075_v50, %v1517_v32 }
 0x1f7   : > { %v641_v52 = vmul.f32 %v640_v51, %v381_v39 }
 0x1f8   : > { %v643_v18 = vld [vmem:[#allocation2] sm:$0xff] }
 0x1f9   : > { %642 = vst [vmem:[#allocation2 + $0xc] sm:$0xf] %v641_v52  ;;  %742 = vmatmul.mubr.f32.vlgmr.msra.gmra.mrb[0].mxu0 %v643_v18 }
 0x1fa   : > { %747 = vmatprep.mubr.f32.mxu0 %v1257_v0 }
 0x200   : > { %v644_v53 = vld [vmem:[#allocation2 + $0x8] sm:$0xff] }
 0x201   : > { %748 = vmatmul.mubr.f32.gmra.mrb[2].mxu0 %v644_v53 }
 0x2cc   : > { %v743_v22 = vpop.f32.mrb[0].mxu0 }
 0x2cd   : > { %754 = vst [vmem:[%s276_s6] sm:$0xff] %v743_v22  ;;  %v745_v27 = vpop.f32.mrb[1].mxu0 }
 0x2ce   : > { %755 = vst [vmem:[%s276_s6 + $0x8] sm:$0xff] %v745_v27 }
 0x2d4   : > { %v749_v0 = vpop.f32.mrb[2].mxu0 }
 0x2d5   : > { %756 = vst [vmem:[%s276_s6 + $0x10] sm:$0xff] %v749_v0  ;;  %v751_v32 = vpop.f32.mrb[3].mxu0 }
 0x2d6   : > { %757 = vst [vmem:[%s276_s6 + $0x18] sm:$0xff] %v751_v32 }
 0x2d7   : > { %1175 = shalt.err (!%p1172_p8)
}
 0x2d8   : > { %s1176_s5 = scalar_lea.hbm %s1538_s23, 512  ;;  %s1180_s26 = scalar_lea.hbm %s1591_s4, 1024 }
 0x2d9   : > { %p1177_p13 = scmp.ne.s32.totalorder %s1538_s23, %s1176_s5  ;;  %p1181_p7 = scmp.lt.u32.totalorder %s1538_s23, %s1591_s4 }
 0x2da   : > { %p1182_p12 = scmp.lt.u32.totalorder %s1180_s26, %s1176_s5  ;;  %p1184_p3 = scmp.lt.u32.totalorder %s1176_s5, %s1538_s23 }
 0x2db   : > { %p1178_p4 = pnand %p1177_p13, %p1612_p10 }
 0x2dc   : > { %p1183_p2 = por %p1182_p12, %p1181_p7 }
 0x2dd   : > { %p1179_p5 = pneg %p1178_p4 }
 0x2de   : > { %p1185_p11 = por %p1184_p3, %p1183_p2 }
 0x2e0   : > { %p1186_p1 = pnand %p1185_p11, %p1179_p5 }
 0x2e2   : > { %1189 = shalt.err (!%p1186_p1)
}
 0x2e3   : > { %s1260_s9 = smov 256   ;;  %s1261_s25 = smov 16  }
 0x2e4   : > { %987 = dma.vmem_to_hbm [thread:$0]  (%p1612_p10), %s1533_s22, 512, %s1538_s23, %s759_s7, %s1260_s9, %s1260_s9, %s1261_s25  }
 0x2e5 PF: > { %s790_s30 = sand.u32 1, %s1228_s15   ;;  %p1613_p0 = scmp.ne.s32.totalorder %s1602_s28, 0 }
 0x2e6   : > { %p1614_p6 = scmp.ge.s32.totalorder %s1248_s20, 2  ;;  %s791_s10 = scalar_lea.sflag [#allocation5], %s790_s30 }
 0x2e8   : > { %p1001_p9 = pnand %p1614_p6, %p1613_p0 }
 0x2ea   : > { %1223 = dma.done.wait (!%p1001_p9), %s791_s10, 512  }
 0x2eb   : > { %1225 = vsyncadd (!%p1001_p9), %s791_s10, 4294966784  ;;  %s21_s20 = sadd.s32 1, %s1248_s20   ;;  %s1615_s15 = smov %s1232_s16 }
 0x2ec   : > { %p18_p8 = scmp.ge.s32.totalorder %s21_s20, 4   ;;  %s1616_s16 = smov %s1236_s17 }
 0x2ed   : > { %s1617_s17 = smov %s1469_s14  ;;  %s1618_s18 = smov %s1244_s19 }
 0x2ee   : > { %s1619_s19 = smov %s1621_s12  ;;  %20 = sbr.rel (!%p18_p8) target bundleno = 7 (0x7), region = 101 }
 0x2f5   :  { %796 = vsyncpa [#allocation4], 1 }
 0x2f6   :  { %798 = vsyncpa [#allocation4 + $0x1], 1 }
 0x2f7   :  { %799 = vsyncpa [#allocation7], 1 }
 0x2f8   :  { %800 = vsyncpa [#allocation5], 1 }
 0x2f9   :  { %802 = vsyncpa [#allocation5 + $0x1], 1 }

</bundles_post_ra>
